<compile_context>
chip_gen: v6e
topology: v6e:2x2x1
jax: 0.10.0
libtpu: 0.0.40
codegen_flags: <defaults>
</compile_context>

<pallas_src>
import functools

import jax
import jax.numpy as jnp
from jax import lax
from jax.experimental import pallas as pl
from jax.experimental.pallas import tpu as pltpu

_LANES = 128
_SUBLANES = 8


def _round_up(x, m):
    return ((x + m - 1) // m) * m


def _kld_partial_kernel(p_ref, out_ref, *, categorical_dim, tile_rows, chunk_rows,
                        rows_total, need_mask):
    """One (tile_rows, 128) block -> one lane-dense (1, 8, 128) f32 partial sum."""
    k = jnp.float32(categorical_dim)
    n_chunks = tile_rows // chunk_rows

    if need_mask:
        # Valid rows remaining in this tile (only the last tile is ragged).
        valid = rows_total - pl.program_id(0) * tile_rows

    def body(c, acc):
        start = pl.multiple_of(c * chunk_rows, _SUBLANES)
        x = p_ref[pl.ds(start, chunk_rows), :].astype(jnp.float32)  # cast in VMEM
        if need_mask:
            row = (lax.broadcasted_iota(jnp.int32, (chunk_rows, _LANES), 0)
                   + c * chunk_rows)
            x = jnp.where(row < valid, x, 0.0)       # zero OOB garbage before the log
        y = x * jnp.log(x * k + 1e-11)                # 0 * log(1e-11) == 0 for padding
        # Fold sublane groups with pure VALU adds; keep result lane-dense.
        return acc + y.reshape(chunk_rows // _SUBLANES, _SUBLANES, _LANES).sum(axis=0)

    acc = lax.fori_loop(0, n_chunks, body,
                        jnp.zeros((_SUBLANES, _LANES), jnp.float32), unroll=True)
    out_ref[...] = acc.reshape(1, _SUBLANES, _LANES)  # unmasked lane-dense store


def kld_gumbel_loss(proba, *, categorical_dim, reduction='mean', weight=0.0,
                    block_rows=8192, chunk_rows=512, use_pallas=None):
    """JAX/Pallas equivalent of KLDGumbelLoss.forward."""
    batch = proba.shape[0]
    n = proba.size
    scale = jnp.exp(jnp.asarray(weight, jnp.float32))

    if use_pallas is None:
        use_pallas = n >= (1 << 20)   # small-input fast path: kernel is pure overhead
    if not use_pallas:
        p = proba.astype(jnp.float32)
        total = jnp.sum(p * jnp.log(p * jnp.float32(categorical_dim) + 1e-11))
        if reduction == 'mean':
            total = total / jnp.float32(batch)
        return total * scale

    # Lane-dense layout: flatten, pad only to a multiple of 8*128 = 1024 elements.
    flat = proba.reshape(-1)
    rows = _round_up(pl.cdiv(n, _LANES), _SUBLANES)
    pad = rows * _LANES - n
    if pad:
        flat = jnp.pad(flat, (0, pad))                # <= 1023 zero elements
    x2d = flat.reshape(rows, _LANES)

    # Tile selection: as big as possible, but >= 2 tiles whenever rows permit so the
    # "parallel" grid axis engages both TensorCores (v7x megacore / both EUPs).
    tile = min(block_rows, rows)
    if rows >= 2 * _SUBLANES:
        tile = min(tile, _round_up(-(-rows // 2), _SUBLANES))
    if tile <= chunk_rows:
        chunk = tile                                   # single sub-chunk
    else:
        tile = (tile // chunk_rows) * chunk_rows       # tile = multiple of chunk
        chunk = chunk_rows
    n_tiles = pl.cdiv(rows, tile)
    need_mask = (rows % tile) != 0                     # ragged last tile?

    partials = pl.pallas_call(
        functools.partial(_kld_partial_kernel,
                          categorical_dim=categorical_dim,
                          tile_rows=tile, chunk_rows=chunk,
                          rows_total=rows, need_mask=need_mask),
        out_shape=jax.ShapeDtypeStruct((n_tiles, _SUBLANES, _LANES), jnp.float32),
        grid=(n_tiles,),
        in_specs=[pl.BlockSpec((tile, _LANES), lambda i: (i, 0))],
        out_specs=pl.BlockSpec((1, _SUBLANES, _LANES), lambda i: (i, 0, 0)),
        compiler_params=pltpu.CompilerParams(
            dimension_semantics=("parallel",),         # shard tiles across TCs
            vmem_limit_bytes=48 * 1024 * 1024),        # < 64 MiB v7x physical VMEM
    )(x2d)

    total = jnp.sum(partials)                          # tiny wrapper-side collapse
    if reduction == 'mean':
        # sum over dim=1 per row then mean over batch == total / batch
        total = total / jnp.float32(batch)
    # `weight` is a scalar (possibly trainable nn.Parameter); exp(weight) scaling
    # is scalar glue outside the kernel.
    return total * scale


def _reference(proba, categorical_dim, reduction='mean', weight=0.0):
    """Pure-JAX reference of KLDGumbelLoss.forward for the sanity check."""
    p = proba.astype(jnp.float32)
    per_row = jnp.sum(p * jnp.log(p * categorical_dim + 1e-11), axis=1)
    val = jnp.mean(per_row) if reduction == 'mean' else jnp.sum(per_row)
    return val * jnp.exp(jnp.float32(weight))


if __name__ == "__main__":
    key = jax.random.PRNGKey(0)
    LATENT_DIM, CATEGORICAL_DIM = 8, 8
    k1, k2, k3 = jax.random.split(key, 3)

    # Small, module-consistent input: softmax over each categorical block,
    # flattened to (batch, latent*categorical), like the DVAE's q.
    B = 8
    logits = jax.random.normal(k1, (B, LATENT_DIM, CATEGORICAL_DIM), jnp.float32)
    proba = jax.nn.softmax(logits, axis=-1).reshape(B, LATENT_DIM * CATEGORICAL_DIM)

    out_mean = kld_gumbel_loss(proba, categorical_dim=CATEGORICAL_DIM,
                               reduction='mean', use_pallas=True)
    out_sum = kld_gumbel_loss(proba, categorical_dim=CATEGORICAL_DIM,
                              reduction='sum', use_pallas=True)
    out_fast = kld_gumbel_loss(proba, categorical_dim=CATEGORICAL_DIM,
                               reduction='mean')            # small-input fast path
    jax.block_until_ready((out_mean, out_sum, out_fast))
    assert jnp.allclose(out_mean, _reference(proba, CATEGORICAL_DIM, 'mean'),
                        rtol=1e-5, atol=1e-5), (out_mean,)
    assert jnp.allclose(out_sum, _reference(proba, CATEGORICAL_DIM, 'sum'),
                        rtol=1e-5, atol=1e-5), (out_sum,)
    assert jnp.allclose(out_fast, _reference(proba, CATEGORICAL_DIM, 'mean'),
                        rtol=1e-5, atol=1e-5), (out_fast,)

    # bf16 case exercising: 2-tile grid, ragged-last-tile masking, minimal pad,
    # and the in-kernel bf16->f32 cast.
    B2 = 300
    logits2 = jax.random.normal(k2, (B2, LATENT_DIM, CATEGORICAL_DIM), jnp.float32)
    proba2 = jax.nn.softmax(logits2, axis=-1).reshape(
        B2, LATENT_DIM * CATEGORICAL_DIM).astype(jnp.bfloat16)
    out2 = kld_gumbel_loss(proba2, categorical_dim=CATEGORICAL_DIM,
                           reduction='mean', weight=0.1, use_pallas=True)
    out2 = jax.block_until_ready(out2)
    assert jnp.allclose(out2, _reference(proba2, CATEGORICAL_DIM, 'mean', 0.1),
                        rtol=5e-3, atol=5e-3), (out2,)

    # f32 case exercising the multi-sub-chunk inner fori_loop (tile > chunk_rows).
    B3 = 4096
    logits3 = jax.random.normal(k3, (B3, LATENT_DIM, CATEGORICAL_DIM), jnp.float32)
    proba3 = jax.nn.softmax(logits3, axis=-1).reshape(B3, LATENT_DIM * CATEGORICAL_DIM)
    out3 = kld_gumbel_loss(proba3, categorical_dim=CATEGORICAL_DIM,
                           reduction='sum', weight=-0.2, use_pallas=True)
    out3 = jax.block_until_ready(out3)
    assert jnp.allclose(out3, _reference(proba3, CATEGORICAL_DIM, 'sum', -0.2),
                        rtol=1e-4, atol=1e-3), (out3,)

    print("KERNEL_OK")
</pallas_src>

<mosaic_0001>
module attributes {stable_mosaic.version = 11 : i64} {
  func.func @_kld_partial_kernel(%arg0: i32, %arg1: memref<8x128xf32, #tpu.memory_space<vmem>>, %arg2: memref<1x8x128xf32, #tpu.memory_space<vmem>>) attributes {dimension_semantics = [#tpu.dimension_semantics<parallel>], iteration_bounds = array<i64: 1>, scalar_prefetch = 0 : i64, scratch_operands = 0 : i64, tpu.core_type = #tpu.core_type<tc>, window_params = [{transform_indices = @transform_0, window_bounds = array<i64: 8, 128>}, {transform_indices = @transform_1, window_bounds = array<i64: 1, 8, 128>}]} {
    %cst = arith.constant 0.000000e+00 : f32
    %0 = vector.broadcast %cst : f32 to vector<8x128xf32>
    %cst_0 = arith.constant 8.000000e+00 : f32
    %c0_i32 = arith.constant 0 : i32
    %c8_i32 = arith.constant 8 : i32
    %1 = arith.muli %c0_i32, %c8_i32 : i32
    %2 = tpu.assume_multiple %1, 8 : i32
    %3 = arith.index_cast %2 : i32 to index
    %c0 = arith.constant 0 : index
    %4 = vector.load %arg1[%3, %c0] : memref<8x128xf32, #tpu.memory_space<vmem>>, vector<8x128xf32>
    %5 = vector.broadcast %cst_0 : f32 to vector<8x128xf32>
    %6 = arith.mulf %4, %5 : vector<8x128xf32>
    %cst_1 = arith.constant 9.99999996E-12 : f32
    %7 = vector.broadcast %cst_1 : f32 to vector<8x128xf32>
    %8 = arith.addf %6, %7 : vector<8x128xf32>
    %9 = math.log %8 : vector<8x128xf32>
    %10 = arith.mulf %4, %9 : vector<8x128xf32>
    %11 = vector.shape_cast %10 : vector<8x128xf32> to vector<1x8x128xf32>
    %cst_2 = arith.constant dense<0.000000e+00> : vector<8x128xf32>
    %12 = vector.multi_reduction <add>, %11, %cst_2 [0] : vector<1x8x128xf32> to vector<8x128xf32>
    %13 = arith.addf %0, %12 : vector<8x128xf32>
    %c1_i32 = arith.constant 1 : i32
    %14 = vector.shape_cast %13 : vector<8x128xf32> to vector<1x8x128xf32>
    %c0_3 = arith.constant 0 : index
    %c0_4 = arith.constant 0 : index
    %c0_5 = arith.constant 0 : index
    %15 = vector.load %arg2[%c0_3, %c0_4, %c0_5] : memref<1x8x128xf32, #tpu.memory_space<vmem>>, vector<1x8x128xf32>
    tpu.vector_store %arg2[%c0_3, %c0_4, %c0_5], %14 {strides = array<i32>} : memref<1x8x128xf32, #tpu.memory_space<vmem>>, vector<1x8x128xf32>,
    return
  }
  func.func @transform_0(%arg0: i32) -> (i32, i32) {
    %c0_i32 = arith.constant 0 : i32
    %c0_i32_0 = arith.constant 0 : i32
    return %arg0, %c0_i32 : i32, i32
  }
  func.func @transform_1(%arg0: i32) -> (i32, i32, i32) {
    %c0_i32 = arith.constant 0 : i32
    %c0_i32_0 = arith.constant 0 : i32
    %c0_i32_1 = arith.constant 0 : i32
    return %arg0, %c0_i32, %c0_i32_0 : i32, i32, i32
  }
}

</mosaic_0001>

<bundles_post_ra>
// kernel: tpu_custom_call.1
= control target key start
LH: loop header
LB: loop body
LE: loop exit
PB: predicated region body
PF: predicated region fallthrough
CT: control target
= control target key end

     0   :  { %6 = vsyncpa [#allocation3], 0  ;;  %s111_s0 = inlined_call_operand.hbm [shape: f32[8,128], index: 0, kind: input, shape index: {}]   ;;  %s112_s1 = inlined_call_operand.hbm [shape: f32[1,8,128], index: 1, kind: output, shape index: {}]  }
   0x1   :  { %7 = vsyncpa [#allocation4], 0  ;;  %s93_s6 = smov [#allocation2]  }
   0x2   :  { %s14_s7 = sshll.u32 %s93_s6, 4  ;;  %s15_s7 = int_to_ptr.vmem [resolvable:$true] %s14_s7 }
   0x3   :  { %s57_s8 = scalar_lea.vmem %s15_s7, 128  ;;  %p62_p1 = scmp.lt.s32.totalorder %s15_s7, %s15_s7 }
   0x4   :  { %p58_p0 = scmp.ne.s32.totalorder %s15_s7, %s57_s8  ;;  %p63_p2 = scmp.lt.s32.totalorder %s57_s8, %s57_s8 }
   0x6   :  { %p64_p3 = por %p63_p2, %p62_p1 }
   0x8   :  { %p65_p4 = pnand %p64_p3, %p58_p0 }
   0xa   :  { %68 = shalt.err (!%p65_p4)
}
   0xb   :  { %17 = dma.hbm_to_vmem [thread:$0]  %s111_s0, 128, %s15_s7, [#allocation3]  }
   0xc   :  { %89 = dma.done.wait [#allocation3], 128  }
   0xd   :  { %90 = vsyncadd [#allocation3], 4294967168  ;;  %v21_v0 = vld [vmem:[#allocation2] sm:$0xff]  ;;  %s94_s11 = smov [#allocation5]  }
   0xe   :  { %v22_v1 = vmul.f32 8.0, %v21_v0  ;;  %s36_s12 = sshll.u32 %s94_s11, 4  ;;  %s37_s12 = int_to_ptr.vmem [resolvable:$true] %s36_s12 }
   0xf   :  { %s69_s13 = scalar_lea.vmem %s37_s12, 128  ;;  %p74_p6 = scmp.lt.s32.totalorder %s37_s12, %s37_s12 }
  0x10   :  { %v23_v2 = vadd.f32 1e-11, %v22_v1  ;;  %p70_p5 = scmp.ne.s32.totalorder %s37_s12, %s69_s13  ;;  %p75_p7 = scmp.lt.s32.totalorder %s69_s13, %s69_s13 }
  0x12   :  { %47 = vlog2.f32 %v23_v2  ;;  %p76_p8 = por %p75_p7, %p74_p6 }
  0x14   :  { %p77_p9 = pnand %p76_p8, %p70_p5 }
  0x1f   :  { %v48_v3 = vpop.eup %47 }
  0x20   :  { %v25_v4 = vmul.f32 0.6931472, %v48_v3 }
  0x22   :  { %v26_v5 = vmul.f32 %v25_v4, %v21_v0 }
  0x24   :  { %29 = vst [vmem:[#allocation5] sm:$0xff] %v26_v5 }
  0x25   :  { %80 = shalt.err (!%p77_p9)
}
  0x26   :  { %39 = dma.vmem_to_hbm [thread:$0]  %s37_s12, 128, %s112_s1, [#allocation4]  }
  0x27   :  { %91 = dma.done.wait [#allocation4], 128  }
  0x28   :  { %92 = vsyncadd [#allocation4], 4294967168 }
  0x29   :  { %43 = vsyncpa [#allocation3], 1 }
  0x2a   :  { %44 = vsyncpa [#allocation4], 1 }

</bundles_post_ra>
